<compile_context>
chip_gen: v7x
topology: tpu7x:2x2x1
jax: 0.10.0
libtpu: 0.0.40
codegen_flags: <defaults>
</compile_context>

<pallas_src>
import jax
import jax.numpy as jnp
from jax.experimental import pallas as pl
from jax.experimental.pallas import tpu as pltpu

EMBED_DIM = 256
HIDDEN1 = 512
HIDDEN2 = 256
NUM_CLASSES = 100
NUM_CLASSES_PAD = 128          # lane-dense output width (multiple of 128)
MAX_TILE_B = 2048              # per-step footprint ~15 MiB, well under VMEM budget
SUBLANE = 16                   # bf16-safe sublane multiple (also fine for f32)


def _round_up(n, m):
    return ((n + m - 1) // m) * m


def _is_v7x():
    """Best-effort detection of a 2-TensorCore (megacore) v7x-class chip."""
    try:
        kind = jax.devices()[0].device_kind.lower()
    except Exception:
        return False
    return ("v7" in kind) or ("7x" in kind)


def mlp_kernel(x_ref, w1_ref, b1_ref, w2_ref, b2_ref, w3_ref, b3_ref, o_ref):
    # fc1 + bias + ReLU   (bf16 operands -> f32 accumulate on the MXU)
    x = x_ref[...].astype(jnp.bfloat16)
    h1 = jnp.dot(x, w1_ref[...], preferred_element_type=jnp.float32)
    h1 = jnp.maximum(h1 + b1_ref[...], 0.0)
    # dropout(p=0.5) -> identity in eval mode
    # fc2 + bias + ReLU
    h2 = jnp.dot(h1.astype(jnp.bfloat16), w2_ref[...],
                 preferred_element_type=jnp.float32)
    h2 = jnp.maximum(h2 + b2_ref[...], 0.0)
    # dropout(p=0.5) -> identity in eval mode
    # fc3 (logits, no activation); output is lane-padded to 128
    out = jnp.dot(h2.astype(jnp.bfloat16), w3_ref[...],
                  preferred_element_type=jnp.float32)
    o_ref[...] = (out + b3_ref[...]).astype(o_ref.dtype)


def art_style_classifier(x, params, *, max_tile_b=MAX_TILE_B, min_tiles=None):
    """x: (B, EMBED_DIM) f32 or bf16 -> logits (B, NUM_CLASSES), dtype follows x."""
    w1, b1, w2, b2, w3p, b3p = params  # w* bf16, b* f32, w3p/b3p lane-padded to 128
    B = x.shape[0]
    out_dtype = x.dtype if x.dtype in (jnp.bfloat16, jnp.float32) else jnp.float32

    # --- Balanced batch tiling ---------------------------------------------
    # n_tiles large batches down to <= max_tile_b rows each; on v7x force >=2
    # tiles for non-trivial batches so the "parallel" axis uses both TCs.
    if min_tiles is None:
        min_tiles = 2 if (_is_v7x() and B >= 256) else 1
    n_tiles = max(min_tiles, pl.cdiv(B, max_tile_b))
    tile_b = _round_up(pl.cdiv(B, n_tiles), SUBLANE)
    b_pad = _round_up(B, tile_b)          # only the final tile carries padding
    if b_pad != B:
        x = jnp.pad(x, ((0, b_pad - B), (0, 0)))
    grid = (b_pad // tile_b,)

    tiled = lambda i: (i, 0)              # x / out stream over the batch axis
    const = lambda i: (0, 0)              # weights / biases resident across steps
    resident = pl.Buffered(1)             # constant index_map -> single buffer

    out_padded = pl.pallas_call(
        mlp_kernel,
        out_shape=jax.ShapeDtypeStruct((b_pad, NUM_CLASSES_PAD), out_dtype),
        grid_spec=pltpu.PrefetchScalarGridSpec(
            num_scalar_prefetch=0,
            grid=grid,
            in_specs=[
                pl.BlockSpec((tile_b, EMBED_DIM), tiled),
                pl.BlockSpec((EMBED_DIM, HIDDEN1), const, pipeline_mode=resident),
                pl.BlockSpec((1, HIDDEN1), const, pipeline_mode=resident),
                pl.BlockSpec((HIDDEN1, HIDDEN2), const, pipeline_mode=resident),
                pl.BlockSpec((1, HIDDEN2), const, pipeline_mode=resident),
                pl.BlockSpec((HIDDEN2, NUM_CLASSES_PAD), const, pipeline_mode=resident),
                pl.BlockSpec((1, NUM_CLASSES_PAD), const, pipeline_mode=resident),
            ],
            out_specs=pl.BlockSpec((tile_b, NUM_CLASSES_PAD), tiled),
        ),
        compiler_params=pltpu.CompilerParams(
            dimension_semantics=("parallel",),
            vmem_limit_bytes=48 << 20,
        ),
    )(x, w1, b1, w2, b2, w3p, b3p)

    return out_padded[:B, :NUM_CLASSES]


def init_params(key):
    """PyTorch nn.Linear-style init (U[-1/sqrt(fan_in), +1/sqrt(fan_in)]).

    Weights stored in bf16 (HBM-bandwidth / MXU-throughput win), biases in f32.
    fc3 weight/bias are zero-padded on the output axis to 128 lanes.
    """
    ks = jax.random.split(key, 6)

    def linear(kw, kb, fan_in, fan_out):
        bound = 1.0 / (fan_in ** 0.5)
        w = jax.random.uniform(kw, (fan_in, fan_out), jnp.float32, -bound, bound)
        b = jax.random.uniform(kb, (1, fan_out), jnp.float32, -bound, bound)
        return w, b

    w1, b1 = linear(ks[0], ks[1], EMBED_DIM, HIDDEN1)
    w2, b2 = linear(ks[2], ks[3], HIDDEN1, HIDDEN2)
    w3, b3 = linear(ks[4], ks[5], HIDDEN2, NUM_CLASSES)

    # Lane-pad fc3 to 128 output columns (zeros -> padded logits are ignored).
    w3p = jnp.pad(w3, ((0, 0), (0, NUM_CLASSES_PAD - NUM_CLASSES)))
    b3p = jnp.pad(b3, ((0, 0), (0, NUM_CLASSES_PAD - NUM_CLASSES)))

    return (w1.astype(jnp.bfloat16), b1,
            w2.astype(jnp.bfloat16), b2,
            w3p.astype(jnp.bfloat16), b3p)


def _reference(x, params):
    """Pure-JAX reference with identical bf16-weight / f32-accumulate math."""
    w1, b1, w2, b2, w3p, b3p = params
    h = jnp.dot(x.astype(jnp.bfloat16), w1, preferred_element_type=jnp.float32)
    h = jnp.maximum(h + b1, 0.0)
    h = jnp.dot(h.astype(jnp.bfloat16), w2, preferred_element_type=jnp.float32)
    h = jnp.maximum(h + b2, 0.0)
    h = jnp.dot(h.astype(jnp.bfloat16), w3p, preferred_element_type=jnp.float32)
    return (h + b3p)[:, :NUM_CLASSES]


if __name__ == "__main__":
    key = jax.random.PRNGKey(0)
    k_params, k_x1, k_x2 = jax.random.split(key, 3)
    params = init_params(k_params)

    # Case 1: small f32 batch -> single (16-row) tile, f32 logits.
    batch = 8
    x = jax.random.normal(k_x1, (batch, EMBED_DIM), jnp.float32)
    logits = art_style_classifier(x, params)
    jax.block_until_ready(logits)
    assert logits.shape == (batch, NUM_CLASSES)
    assert logits.dtype == jnp.float32
    assert jnp.allclose(logits, _reference(x, params), atol=1e-3, rtol=1e-3)

    # Case 2: ragged bf16 batch, forced multi-tile path (balanced tiles):
    # B=600 with max_tile_b=256 -> 3 balanced tiles of 208 rows (b_pad=624,
    # <4% padding vs 41% with the old fixed-512 scheme). bf16 in -> bf16 out.
    batch2 = 600
    x2 = jax.random.normal(k_x2, (batch2, EMBED_DIM), jnp.float32).astype(jnp.bfloat16)
    logits2 = art_style_classifier(x2, params, max_tile_b=256)
    jax.block_until_ready(logits2)
    assert logits2.shape == (batch2, NUM_CLASSES)
    assert logits2.dtype == jnp.bfloat16
    ref2 = _reference(x2, params)
    assert jnp.allclose(logits2.astype(jnp.float32), ref2, atol=3e-2, rtol=3e-2)

    print("KERNEL_OK")
</pallas_src>

<mosaic_0001>
module attributes {stable_mosaic.version = 11 : i64} {
  func.func @mlp_kernel(%arg0: i32, %arg1: memref<16x256xf32, #tpu.memory_space<vmem>>, %arg2: memref<256x512xbf16, #tpu.memory_space<vmem>>, %arg3: memref<1x512xf32, #tpu.memory_space<vmem>>, %arg4: memref<512x256xbf16, #tpu.memory_space<vmem>>, %arg5: memref<1x256xf32, #tpu.memory_space<vmem>>, %arg6: memref<256x128xbf16, #tpu.memory_space<vmem>>, %arg7: memref<1x128xf32, #tpu.memory_space<vmem>>, %arg8: memref<16x128xf32, #tpu.memory_space<vmem>>) attributes {dimension_semantics = [#tpu.dimension_semantics<parallel>], iteration_bounds = array<i64: 1>, scalar_prefetch = 0 : i64, scratch_operands = 0 : i64, tpu.core_type = #tpu.core_type<tc>, window_params = [{transform_indices = @transform_0, window_bounds = array<i64: 16, 256>}, {pipeline_mode = #tpu.pipeline_mode<synchronous>, transform_indices = @transform_1, window_bounds = array<i64: 256, 512>}, {pipeline_mode = #tpu.pipeline_mode<synchronous>, transform_indices = @transform_2, window_bounds = array<i64: 1, 512>}, {pipeline_mode = #tpu.pipeline_mode<synchronous>, transform_indices = @transform_3, window_bounds = array<i64: 512, 256>}, {pipeline_mode = #tpu.pipeline_mode<synchronous>, transform_indices = @transform_4, window_bounds = array<i64: 1, 256>}, {pipeline_mode = #tpu.pipeline_mode<synchronous>, transform_indices = @transform_5, window_bounds = array<i64: 256, 128>}, {pipeline_mode = #tpu.pipeline_mode<synchronous>, transform_indices = @transform_6, window_bounds = array<i64: 1, 128>}, {transform_indices = @transform_7, window_bounds = array<i64: 16, 128>}]} {
    %c0 = arith.constant 0 : index
    %c0_0 = arith.constant 0 : index
    %0 = vector.load %arg1[%c0, %c0_0] : memref<16x256xf32, #tpu.memory_space<vmem>>, vector<16x256xf32>
    %1 = arith.truncf %0 : vector<16x256xf32> to vector<16x256xbf16>
    %c0_1 = arith.constant 0 : index
    %c0_2 = arith.constant 0 : index
    %2 = vector.load %arg2[%c0_1, %c0_2] : memref<256x512xbf16, #tpu.memory_space<vmem>>, vector<256x512xbf16>
    %cst = arith.constant dense<0.000000e+00> : vector<16x512xf32>
    %3 = tpu.matmul %1, %2, %cst {dimension_numbers = #tpu.dot_dimension_numbers<[1], [0], [0], [1], [0, 0, 1, 1], [], []>} : vector<16x256xbf16>, vector<256x512xbf16>, vector<16x512xf32> -> vector<16x512xf32>
    %c0_3 = arith.constant 0 : index
    %c0_4 = arith.constant 0 : index
    %4 = vector.load %arg3[%c0_3, %c0_4] : memref<1x512xf32, #tpu.memory_space<vmem>>, vector<1x512xf32>
    %5 = vector.broadcast %4 : vector<1x512xf32> to vector<16x512xf32>
    %6 = arith.addf %3, %5 : vector<16x512xf32>
    %cst_5 = arith.constant 0.000000e+00 : f32
    %7 = vector.broadcast %cst_5 : f32 to vector<16x512xf32>
    %8 = arith.maximumf %6, %7 : vector<16x512xf32>
    %9 = arith.truncf %8 : vector<16x512xf32> to vector<16x512xbf16>
    %c0_6 = arith.constant 0 : index
    %c0_7 = arith.constant 0 : index
    %10 = vector.load %arg4[%c0_6, %c0_7] : memref<512x256xbf16, #tpu.memory_space<vmem>>, vector<512x256xbf16>
    %cst_8 = arith.constant dense<0.000000e+00> : vector<16x256xf32>
    %11 = tpu.matmul %9, %10, %cst_8 {dimension_numbers = #tpu.dot_dimension_numbers<[1], [0], [0], [1], [0, 0, 1, 1], [], []>} : vector<16x512xbf16>, vector<512x256xbf16>, vector<16x256xf32> -> vector<16x256xf32>
    %c0_9 = arith.constant 0 : index
    %c0_10 = arith.constant 0 : index
    %12 = vector.load %arg5[%c0_9, %c0_10] : memref<1x256xf32, #tpu.memory_space<vmem>>, vector<1x256xf32>
    %13 = vector.broadcast %12 : vector<1x256xf32> to vector<16x256xf32>
    %14 = arith.addf %11, %13 : vector<16x256xf32>
    %cst_11 = arith.constant 0.000000e+00 : f32
    %15 = vector.broadcast %cst_11 : f32 to vector<16x256xf32>
    %16 = arith.maximumf %14, %15 : vector<16x256xf32>
    %17 = arith.truncf %16 : vector<16x256xf32> to vector<16x256xbf16>
    %c0_12 = arith.constant 0 : index
    %c0_13 = arith.constant 0 : index
    %18 = vector.load %arg6[%c0_12, %c0_13] : memref<256x128xbf16, #tpu.memory_space<vmem>>, vector<256x128xbf16>
    %cst_14 = arith.constant dense<0.000000e+00> : vector<16x128xf32>
    %19 = tpu.matmul %17, %18, %cst_14 {dimension_numbers = #tpu.dot_dimension_numbers<[1], [0], [0], [1], [0, 0, 1, 1], [], []>} : vector<16x256xbf16>, vector<256x128xbf16>, vector<16x128xf32> -> vector<16x128xf32>
    %c0_15 = arith.constant 0 : index
    %c0_16 = arith.constant 0 : index
    %20 = vector.load %arg7[%c0_15, %c0_16] : memref<1x128xf32, #tpu.memory_space<vmem>>, vector<1x128xf32>
    %21 = vector.broadcast %20 : vector<1x128xf32> to vector<16x128xf32>
    %22 = arith.addf %19, %21 : vector<16x128xf32>
    %c0_17 = arith.constant 0 : index
    %c0_18 = arith.constant 0 : index
    %23 = vector.load %arg8[%c0_17, %c0_18] : memref<16x128xf32, #tpu.memory_space<vmem>>, vector<16x128xf32>
    tpu.vector_store %arg8[%c0_17, %c0_18], %22 {strides = array<i32>} : memref<16x128xf32, #tpu.memory_space<vmem>>, vector<16x128xf32>,
    return
  }
  func.func @transform_0(%arg0: i32) -> (i32, i32) {
    %c0_i32 = arith.constant 0 : i32
    %c0_i32_0 = arith.constant 0 : i32
    return %arg0, %c0_i32 : i32, i32
  }
  func.func @transform_1(%arg0: i32) -> (i32, i32) {
    %c0_i32 = arith.constant 0 : i32
    %c0_i32_0 = arith.constant 0 : i32
    %c0_i32_1 = arith.constant 0 : i32
    return %c0_i32, %c0_i32_0 : i32, i32
  }
  func.func @transform_2(%arg0: i32) -> (i32, i32) {
    %c0_i32 = arith.constant 0 : i32
    %c0_i32_0 = arith.constant 0 : i32
    %c0_i32_1 = arith.constant 0 : i32
    return %c0_i32, %c0_i32_0 : i32, i32
  }
  func.func @transform_3(%arg0: i32) -> (i32, i32) {
    %c0_i32 = arith.constant 0 : i32
    %c0_i32_0 = arith.constant 0 : i32
    %c0_i32_1 = arith.constant 0 : i32
    return %c0_i32, %c0_i32_0 : i32, i32
  }
  func.func @transform_4(%arg0: i32) -> (i32, i32) {
    %c0_i32 = arith.constant 0 : i32
    %c0_i32_0 = arith.constant 0 : i32
    %c0_i32_1 = arith.constant 0 : i32
    return %c0_i32, %c0_i32_0 : i32, i32
  }
  func.func @transform_5(%arg0: i32) -> (i32, i32) {
    %c0_i32 = arith.constant 0 : i32
    %c0_i32_0 = arith.constant 0 : i32
    %c0_i32_1 = arith.constant 0 : i32
    return %c0_i32, %c0_i32_0 : i32, i32
  }
  func.func @transform_6(%arg0: i32) -> (i32, i32) {
    %c0_i32 = arith.constant 0 : i32
    %c0_i32_0 = arith.constant 0 : i32
    %c0_i32_1 = arith.constant 0 : i32
    return %c0_i32, %c0_i32_0 : i32, i32
  }
  func.func @transform_7(%arg0: i32) -> (i32, i32) {
    %c0_i32 = arith.constant 0 : i32
    %c0_i32_0 = arith.constant 0 : i32
    return %arg0, %c0_i32 : i32, i32
  }
}

</mosaic_0001>

<bundles_post_ra>
// kernel: tpu_custom_call.1
= control target key start
LH: loop header
LB: loop body
LE: loop exit
PB: predicated region body
PF: predicated region fallthrough
CT: control target
= control target key end

     0   :  { %12 = vsyncpa [#allocation3], 0  ;;  %s1951_s0 = inlined_call_operand.hbm [shape: f32[16,256], index: 0, kind: input, shape index: {}]   ;;  %s1952_s1 = inlined_call_operand.hbm [shape: bf16[256,512], index: 1, kind: input, shape index: {}]   ;;  %s1953_s2 = inlined_call_operand.vmem [shape: f32[1,512], index: 2, kind: input, shape index: {}]   ;;  %s1954_s3 = inlined_call_operand.hbm [shape: bf16[512,256], index: 3, kind: input, shape index: {}]   ;;  %s1955_s4 = inlined_call_operand.vmem [shape: f32[1,256], index: 4, kind: input, shape index: {}]   ;;  %s1956_s5 = inlined_call_operand.hbm [shape: bf16[256,128], index: 5, kind: input, shape index: {}]   ;;  %s1957_s6 = inlined_call_operand.vmem [shape: f32[1,128], index: 6, kind: input, shape index: {}]   ;;  %s1958_s7 = inlined_call_operand.hbm [shape: f32[16,128], index: 7, kind: output, shape index: {}]  }
   0x1   :  { %13 = vsyncpa [#allocation6], 0 }
   0x2   :  { %14 = vsyncpa [#allocation9], 0 }
   0x3   :  { %15 = vsyncpa [#allocation4], 0  ;;  %s1790_s24 = smov [#allocation5]   ;;  %s1791_s26 = smov [#allocation2]  }
   0x4   :  { %s33_s25 = sshll.u32 %s1790_s24, 4  ;;  %s21_s27 = sshll.u32 %s1791_s26, 4  ;;  %s34_s25 = int_to_ptr.vmem [resolvable:$true] %s33_s25  ;;  %s1841_s27 = int_to_ptr.vmem [resolvable:$true] %s21_s27 }
   0x5   :  { %s1672_s30 = scalar_lea.hbm %s1952_s1, 8192 }
   0x6   :  { %p1673_p0 = scmp.ne.s32.totalorder %s1952_s1, %s1672_s30  ;;  %p1676_p1 = scmp.lt.u32.totalorder %s1672_s30, %s1952_s1 }
   0x8   :  { %p1678_p2 = pnand %p1676_p1, %p1673_p0 }
   0xa   :  { %1681 = shalt.err (!%p1678_p2)
}
   0xb   :  { %s1682_s12 = scalar_lea.vmem %s34_s25, 8192  ;;  %p1687_p4 = scmp.lt.s32.totalorder %s34_s25, %s34_s25 }
   0xc   :  { %p1683_p3 = scmp.ne.s32.totalorder %s34_s25, %s1682_s12  ;;  %p1688_p5 = scmp.lt.s32.totalorder %s1682_s12, %s1682_s12 }
   0xe   :  { %p1689_p6 = por %p1688_p5, %p1687_p4 }
  0x10   :  { %p1690_p7 = pnand %p1689_p6, %p1683_p3 }
  0x12   :  { %1693 = shalt.err (!%p1690_p7)
}
  0x13   :  { %s1792_s13 = smov 256   ;;  %s1793_s14 = smov 16  }
  0x14   :  { %39 = dma.hbm_to_vmem [thread:$0]  %s1952_s1, 8192, %s34_s25, [#allocation6], %s1792_s13, %s1792_s13, %s1793_s14  }
  0x15   :  { %s1694_s19 = scalar_lea.hbm %s1951_s0, 512 }
  0x16   :  { %p1695_p8 = scmp.ne.s32.totalorder %s1951_s0, %s1694_s19  ;;  %p1698_p9 = scmp.lt.u32.totalorder %s1694_s19, %s1951_s0 }
  0x18   :  { %p1700_p10 = pnand %p1698_p9, %p1695_p8 }
  0x1a   :  { %1703 = shalt.err (!%p1700_p10)
}
  0x1b   :  { %s1704_s24 = scalar_lea.vmem %s1841_s27, 512  ;;  %p1709_p12 = scmp.lt.s32.totalorder %s1841_s27, %s1841_s27 }
  0x1c   :  { %p1705_p11 = scmp.ne.s32.totalorder %s1841_s27, %s1704_s24  ;;  %p1710_p13 = scmp.lt.s32.totalorder %s1704_s24, %s1704_s24 }
  0x1e   :  { %p1711_p0 = por %p1710_p13, %p1709_p12 }
  0x20   :  { %p1712_p1 = pnand %p1711_p0, %p1705_p11 }
  0x22   :  { %1715 = shalt.err (!%p1712_p1)
}
  0x23   :  { %27 = dma.hbm_to_vmem [thread:$0]  %s1951_s0, 512, %s1841_s27, [#allocation3], %s1792_s13, %s1792_s13, %s1793_s14  }
  0x24   :  { %s1794_s26 = smov [#allocation7]   ;;  %s1716_s8 = scalar_lea.hbm %s1954_s3, 8192 }
  0x25   :  { %s47_s28 = sshll.u32 %s1794_s26, 4  ;;  %p1717_p2 = scmp.ne.s32.totalorder %s1954_s3, %s1716_s8  ;;  %s48_s28 = int_to_ptr.vmem [resolvable:$true] %s47_s28 }
  0x26   :  { %p1720_p3 = scmp.lt.u32.totalorder %s1716_s8, %s1954_s3 }
  0x28   :  { %p1722_p4 = pnand %p1720_p3, %p1717_p2 }
  0x2a   :  { %1725 = shalt.err (!%p1722_p4)
}
  0x2b   :  { %s1726_s15 = scalar_lea.vmem %s48_s28, 8192  ;;  %p1731_p6 = scmp.lt.s32.totalorder %s48_s28, %s48_s28 }
  0x2c   :  { %p1727_p5 = scmp.ne.s32.totalorder %s48_s28, %s1726_s15  ;;  %p1732_p7 = scmp.lt.s32.totalorder %s1726_s15, %s1726_s15 }
  0x2e   :  { %p1733_p8 = por %p1732_p7, %p1731_p6 }
  0x30   :  { %p1734_p9 = pnand %p1733_p8, %p1727_p5 }
  0x32   :  { %1737 = shalt.err (!%p1734_p9)
}
  0x33   :  { %s1795_s0 = smov 128   ;;  %s1796_s27 = smov 8  }
  0x34   :  { %53 = dma.hbm_to_vmem [thread:$0]  %s1954_s3, 8192, %s48_s28, [#allocation6], %s1795_s0, %s1795_s0, %s1796_s27  }
  0x35   :  { %s1797_s16 = smov [#allocation8]   ;;  %s1738_s20 = scalar_lea.hbm %s1956_s5, 2048 }
  0x36   :  { %s61_s17 = sshll.u32 %s1797_s16, 4  ;;  %p1739_p10 = scmp.ne.s32.totalorder %s1956_s5, %s1738_s20  ;;  %s62_s17 = int_to_ptr.vmem [resolvable:$true] %s61_s17 }
  0x37   :  { %p1742_p11 = scmp.lt.u32.totalorder %s1738_s20, %s1956_s5 }
  0x39   :  { %p1744_p12 = pnand %p1742_p11, %p1739_p10 }
  0x3b   :  { %1747 = shalt.err (!%p1744_p12)
}
  0x3c   :  { %s1748_s1 = scalar_lea.vmem %s62_s17, 2048  ;;  %p1753_p0 = scmp.lt.s32.totalorder %s62_s17, %s62_s17 }
  0x3d   :  { %p1749_p13 = scmp.ne.s32.totalorder %s62_s17, %s1748_s1  ;;  %p1754_p1 = scmp.lt.s32.totalorder %s1748_s1, %s1748_s1 }
  0x3f   :  { %p1755_p2 = por %p1754_p1, %p1753_p0 }
  0x41   :  { %p1756_p3 = pnand %p1755_p2, %p1749_p13 }
  0x43   :  { %1759 = shalt.err (!%p1756_p3)
}
  0x44   :  { %s1798_s3 = smov 64   ;;  %s1799_s25 = smov 4  }
  0x45   :  { %67 = dma.hbm_to_vmem [thread:$0]  %s1956_s5, 2048, %s62_s17, [#allocation9], %s1798_s3, %s1798_s3, %s1799_s25  }
  0x46   :  { %1782 = dma.done.wait [#allocation3], 512  }
  0x47   :  { %1783 = vsyncadd [#allocation3], 4294966784 }
  0x48   :  { %1784 = dma.done.wait [#allocation6], 16384  }
  0x49   :  { %1785 = vsyncadd [#allocation6], 4294950912 }
  0x4a   :  { %1786 = dma.done.wait [#allocation9], 2048  }
  0x4b   :  { %1787 = vsyncadd [#allocation9], 4294965248  ;;  %v1464_v0 = vld [vmem:[#allocation5 + $0x4] ss:$16 sps:$4 sm:$0xff]   ;;  %v1466_v1 = vld [vmem:[#allocation5] ss:$16 sps:$4 sm:$0xff]  }
  0x4c   :  { %495 = vmatprep.subr.bf16.mxu1 %v1464_v0  ;;  %v1467_v2 = vld [vmem:[#allocation5 + $0x24] ss:$16 sps:$4 sm:$0xff]   ;;  %v1469_v3 = vld [vmem:[#allocation5 + $0x20] ss:$16 sps:$4 sm:$0xff]   ;;  %v84_v13 = vld [vmem:[#allocation2 + $0x8] sm:$0xff]  ;;  %s1800_s9 = smov [#allocation10]  }
  0x4d   :  { %496 = vmatpush1.bf16.msra.mxu1 %v1466_v1  ;;  %v1470_v4 = vld [vmem:[#allocation5 + $0x44] ss:$16 sps:$4 sm:$0xff]   ;;  %v1472_v5 = vld [vmem:[#allocation5 + $0x40] ss:$16 sps:$4 sm:$0xff]   ;;  %v86_v14 = vld [vmem:[#allocation2 + $0x18] sm:$0xff]  ;;  %s1264_s10 = sshll.u32 %s1800_s9, 4  ;;  %s1265_s10 = int_to_ptr.vmem [resolvable:$true] %s1264_s10 }
  0x4e   :  { %497 = vmatprep.subr.bf16.mxu1 %v1467_v2  ;;  %v1473_v6 = vld [vmem:[#allocation5 + $0x64] ss:$16 sps:$4 sm:$0xff]   ;;  %v1475_v7 = vld [vmem:[#allocation5 + $0x60] ss:$16 sps:$4 sm:$0xff]   ;;  %v1899_v15 = vpack.c.bf16 %v86_v14, %v84_v13  ;;  %v1514_v46 = vld [vmem:[#allocation5 + $0xc] ss:$16 sps:$4 sm:$0xff]   ;;  %p1765_p5 = scmp.lt.s32.totalorder %s1265_s10, %s1265_s10 }
  0x4f   :  { %v1476_v8 = vld [vmem:[#allocation5 + $0x84] ss:$16 sps:$4 sm:$0xff]   ;;  %v1478_v9 = vld [vmem:[#allocation5 + $0x80] ss:$16 sps:$4 sm:$0xff]   ;;  %v1512_v49 = vld [vmem:[#allocation5 + $0x8] ss:$16 sps:$4 sm:$0xff]  }
  0x50   :  { %v1479_v10 = vld [vmem:[#allocation5 + $0xa4] ss:$16 sps:$4 sm:$0xff]   ;;  %v1481_v11 = vld [vmem:[#allocation5 + $0xa0] ss:$16 sps:$4 sm:$0xff]   ;;  %527 = vmatprep.mubr.bf16.mxu1 %v1899_v15  ;;  %v1517_v51 = vld [vmem:[#allocation5 + $0x2c] ss:$16 sps:$4 sm:$0xff]  }
  0x51   :  { %498 = vmatpush1.bf16.msra.mxu1 %v1469_v3  ;;  %v1482_v12 = vld [vmem:[#allocation5 + $0xc4] ss:$16 sps:$4 sm:$0xff]   ;;  %v1484_v16 = vld [vmem:[#allocation5 + $0xc0] ss:$16 sps:$4 sm:$0xff]   ;;  %v1515_v54 = vld [vmem:[#allocation5 + $0x28] ss:$16 sps:$4 sm:$0xff]  }
  0x52   :  { %499 = vmatprep.subr.bf16.mxu1 %v1470_v4  ;;  %v1485_v17 = vld [vmem:[#allocation5 + $0xe4] ss:$16 sps:$4 sm:$0xff]   ;;  %v1487_v18 = vld [vmem:[#allocation5 + $0xe0] ss:$16 sps:$4 sm:$0xff]   ;;  %v1520_v55 = vld [vmem:[#allocation5 + $0x4c] ss:$16 sps:$4 sm:$0xff]  }
  0x53   :  { %v1488_v19 = vld [vmem:[#allocation5 + $0x104] ss:$16 sps:$4 sm:$0xff]   ;;  %v1490_v20 = vld [vmem:[#allocation5 + $0x100] ss:$16 sps:$4 sm:$0xff]   ;;  %v1518_v58 = vld [vmem:[#allocation5 + $0x48] ss:$16 sps:$4 sm:$0xff]  }
  0x54   :  { %v1491_v21 = vld [vmem:[#allocation5 + $0x124] ss:$16 sps:$4 sm:$0xff]   ;;  %v1493_v22 = vld [vmem:[#allocation5 + $0x120] ss:$16 sps:$4 sm:$0xff]   ;;  %v1523_v59 = vld [vmem:[#allocation5 + $0x6c] ss:$16 sps:$4 sm:$0xff]  }
  0x55   :  { %500 = vmatpush1.bf16.msra.mxu1 %v1472_v5  ;;  %v1494_v23 = vld [vmem:[#allocation5 + $0x144] ss:$16 sps:$4 sm:$0xff]   ;;  %v1496_v24 = vld [vmem:[#allocation5 + $0x140] ss:$16 sps:$4 sm:$0xff]   ;;  %v1521_v62 = vld [vmem:[#allocation5 + $0x68] ss:$16 sps:$4 sm:$0xff]  }
  0x56   :  { %501 = vmatprep.subr.bf16.mxu1 %v1473_v6  ;;  %v1497_v25 = vld [vmem:[#allocation5 + $0x164] ss:$16 sps:$4 sm:$0xff]   ;;  %v1499_v26 = vld [vmem:[#allocation5 + $0x160] ss:$16 sps:$4 sm:$0xff]   ;;  %v1526_v63 = vld [vmem:[#allocation5 + $0x8c] ss:$16 sps:$4 sm:$0xff]  }
  0x57   :  { %v1500_v27 = vld [vmem:[#allocation5 + $0x184] ss:$16 sps:$4 sm:$0xff]   ;;  %v1562_v29 = vld [vmem:[#allocation7] ss:$8 sps:$4 sm:$0xff]   ;;  %v1565_v33 = vld [vmem:[#allocation7 + $0x10] ss:$8 sps:$4 sm:$0xff]  }
  0x58   :  { %v1560_v28 = vld [vmem:[#allocation7 + $0x4] ss:$8 sps:$4 sm:$0xff]   ;;  %v1502_v30 = vld [vmem:[#allocation5 + $0x180] ss:$16 sps:$4 sm:$0xff]   ;;  %v1563_v31 = vld [vmem:[#allocation7 + $0x14] ss:$8 sps:$4 sm:$0xff]  }
  0x59   :  { %502 = vmatpush1.bf16.msra.mxu1 %v1475_v7  ;;  %989 = vmatprep.subr.bf16.mxu0 %v1560_v28  ;;  %v1503_v32 = vld [vmem:[#allocation5 + $0x1a4] ss:$16 sps:$4 sm:$0xff]   ;;  %v1505_v35 = vld [vmem:[#allocation5 + $0x1a0] ss:$16 sps:$4 sm:$0xff]   ;;  %v1524_v2 = vld [vmem:[#allocation5 + $0x88] ss:$16 sps:$4 sm:$0xff]  }
  0x5a   :  { %503 = vmatprep.subr.bf16.mxu1 %v1476_v8  ;;  %990 = vmatpush1.bf16.msra.mxu0 %v1562_v29  ;;  %v1566_v34 = vld [vmem:[#allocation7 + $0x24] ss:$8 sps:$4 sm:$0xff]   ;;  %v1568_v37 = vld [vmem:[#allocation7 + $0x20] ss:$8 sps:$4 sm:$0xff]   ;;  %v1569_v38 = vld [vmem:[#allocation7 + $0x34] ss:$8 sps:$4 sm:$0xff]  }
  0x5b   :  { %991 = vmatprep.subr.bf16.mxu0 %v1563_v31  ;;  %v1506_v36 = vld [vmem:[#allocation5 + $0x1c4] ss:$16 sps:$4 sm:$0xff]   ;;  %v1508_v39 = vld [vmem:[#allocation5 + $0x1c0] ss:$16 sps:$4 sm:$0xff]   ;;  %v1529_v3 = vld [vmem:[#allocation5 + $0xac] ss:$16 sps:$4 sm:$0xff]  }
  0x5c   :  { %v1509_v40 = vld [vmem:[#allocation5 + $0x1e4] ss:$16 sps:$4 sm:$0xff]   ;;  %v1571_v41 = vld [vmem:[#allocation7 + $0x30] ss:$8 sps:$4 sm:$0xff]   ;;  %v1574_v47 = vld [vmem:[#allocation7 + $0x40] ss:$8 sps:$4 sm:$0xff]  }
  0x5d   :  { %504 = vmatpush1.bf16.msra.mxu1 %v1478_v9  ;;  %v1572_v42 = vld [vmem:[#allocation7 + $0x44] ss:$8 sps:$4 sm:$0xff]   ;;  %v1511_v43 = vld [vmem:[#allocation5 + $0x1e0] ss:$16 sps:$4 sm:$0xff]   ;;  %v1575_v48 = vld [vmem:[#allocation7 + $0x54] ss:$8 sps:$4 sm:$0xff]  }
  0x5e   :  { %505 = vmatprep.subr.bf16.mxu1 %v1479_v10  ;;  %992 = vmatpush1.bf16.msra.mxu0 %v1565_v33  ;;  %v83_v44 = vld [vmem:[#allocation2] sm:$0xff]  ;;  %v85_v45 = vld [vmem:[#allocation2 + $0x10] sm:$0xff]  ;;  %v1527_v6 = vld [vmem:[#allocation5 + $0xa8] ss:$16 sps:$4 sm:$0xff]   ;;  %s1760_s11 = scalar_lea.vmem %s1265_s10, 256 }
  0x5f   :  { %993 = vmatprep.subr.bf16.mxu0 %v1566_v34  ;;  %v1902_v50 = vpack.c.bf16 %v85_v45, %v83_v44  ;;  %v1577_v52 = vld [vmem:[#allocation7 + $0x50] ss:$8 sps:$4 sm:$0xff]   ;;  %v1578_v53 = vld [vmem:[#allocation7 + $0x64] ss:$8 sps:$4 sm:$0xff]   ;;  %v1580_v56 = vld [vmem:[#allocation7 + $0x60] ss:$8 sps:$4 sm:$0xff]   ;;  %p1761_p4 = scmp.ne.s32.totalorder %s1265_s10, %s1760_s11  ;;  %p1766_p6 = scmp.lt.s32.totalorder %s1760_s11, %s1760_s11 }
  0x60   :  { %v1581_v57 = vld [vmem:[#allocation7 + $0x74] ss:$8 sps:$4 sm:$0xff]   ;;  %v1583_v60 = vld [vmem:[#allocation7 + $0x70] ss:$8 sps:$4 sm:$0xff]   ;;  %v1584_v61 = vld [vmem:[#allocation7 + $0x84] ss:$8 sps:$4 sm:$0xff]  }
  0x61   :  { %506 = vmatpush1.bf16.msra.mxu1 %v1481_v11  ;;  %v1586_v0 = vld [vmem:[#allocation7 + $0x80] ss:$8 sps:$4 sm:$0xff]   ;;  %v1587_v1 = vld [vmem:[#allocation7 + $0x94] ss:$8 sps:$4 sm:$0xff]   ;;  %v1589_v4 = vld [vmem:[#allocation7 + $0x90] ss:$8 sps:$4 sm:$0xff]   ;;  %p1767_p7 = por %p1766_p6, %p1765_p5 }
  0x62   :  { %507 = vmatprep.subr.bf16.mxu1 %v1482_v12  ;;  %994 = vmatpush1.bf16.msra.mxu0 %v1568_v37  ;;  %v1590_v5 = vld [vmem:[#allocation7 + $0xa4] ss:$8 sps:$4 sm:$0xff]   ;;  %v1592_v8 = vld [vmem:[#allocation7 + $0xa0] ss:$8 sps:$4 sm:$0xff]   ;;  %v1593_v9 = vld [vmem:[#allocation7 + $0xb4] ss:$8 sps:$4 sm:$0xff]  }
  0x63   :  { %995 = vmatprep.subr.bf16.mxu0 %v1569_v38  ;;  %v1532_v7 = vld [vmem:[#allocation5 + $0xcc] ss:$16 sps:$4 sm:$0xff]   ;;  %v1530_v10 = vld [vmem:[#allocation5 + $0xc8] ss:$16 sps:$4 sm:$0xff]   ;;  %v1661_v44 = vld [vmem:[#allocation8 + $0x10] sm:$0xff]   ;;  %p1768_p8 = pnand %p1767_p7, %p1761_p4 }
  0x64   :  { %v1535_v11 = vld [vmem:[#allocation5 + $0xec] ss:$16 sps:$4 sm:$0xff]   ;;  %v1595_v12 = vld [vmem:[#allocation7 + $0xb0] ss:$8 sps:$4 sm:$0xff]  }
  0x65   :  { %508 = vmatpush1.bf16.msra.mxu1 %v1484_v16  ;;  %v1596_v13 = vld [vmem:[#allocation7 + $0xc4] ss:$8 sps:$4 sm:$0xff]   ;;  %v1533_v14 = vld [vmem:[#allocation5 + $0xe8] ss:$16 sps:$4 sm:$0xff]  }
  0x66   :  { %509 = vmatprep.subr.bf16.mxu1 %v1485_v17  ;;  %996 = vmatpush1.bf16.msra.mxu0 %v1571_v41  ;;  %v1598_v16 = vld [vmem:[#allocation7 + $0xc0] ss:$8 sps:$4 sm:$0xff]   ;;  %v1599_v17 = vld [vmem:[#allocation7 + $0xd4] ss:$8 sps:$4 sm:$0xff]   ;;  %v1601_v33 = vld [vmem:[#allocation7 + $0xd0] ss:$8 sps:$4 sm:$0xff]  }
  0x67   :  { %997 = vmatprep.subr.bf16.mxu0 %v1572_v42  ;;  %v1551_v28 = vld [vmem:[#allocation5 + $0x1a8] ss:$16 sps:$4 sm:$0xff]   ;;  %v1556_v29 = vld [vmem:[#allocation5 + $0x1cc] ss:$16 sps:$4 sm:$0xff]  }
  0x68   :  { %v1559_v31 = vld [vmem:[#allocation5 + $0x1ec] ss:$16 sps:$4 sm:$0xff]   ;;  %v1607_v37 = vld [vmem:[#allocation7 + $0xf0] ss:$8 sps:$4 sm:$0xff]  }
  0x69   :  { %510 = vmatpush1.bf16.msra.mxu1 %v1487_v18  ;;  %v1536_v18 = vld [vmem:[#allocation5 + $0x108] ss:$16 sps:$4 sm:$0xff]   ;;  %v1602_v34 = vld [vmem:[#allocation7 + $0xe4] ss:$8 sps:$4 sm:$0xff]  }
  0x6a   :  { %511 = vmatprep.subr.bf16.mxu1 %v1488_v19  ;;  %998 = vmatpush1.bf16.msra.mxu0 %v1574_v47  ;;  %v1541_v19 = vld [vmem:[#allocation5 + $0x12c] ss:$16 sps:$4 sm:$0xff]   ;;  %v1664_v47 = vld [vmem:[#allocation8 + $0x60] sm:$0xff]  }
  0x6b   :  { %999 = vmatprep.subr.bf16.mxu0 %v1575_v48  ;;  %v1610_v38 = vld [vmem:[#allocation7 + $0x104] ss:$8 sps:$4 sm:$0xff]   ;;  %v1662_v45 = vld [vmem:[#allocation8 + $0x58] sm:$0xff]  }
  0x6c   :  { %v1658_v41 = vld [vmem:[#allocation8 + $0x48] sm:$0xff]   ;;  %v1665_v48 = vld [vmem:[#allocation8 + $0x20] sm:$0xff]  }
  0x6d   :  { %512 = vmatpush1.bf16.msra.mxu1 %v1490_v20  ;;  %v1539_v20 = vld [vmem:[#allocation5 + $0x128] ss:$16 sps:$4 sm:$0xff]  }
  0x6e   :  { %513 = vmatprep.subr.bf16.mxu1 %v1491_v21  ;;  %1000 = vmatpush1.bf16.msra.mxu0 %v1577_v52  ;;  %v1544_v21 = vld [vmem:[#allocation5 + $0x14c] ss:$16 sps:$4 sm:$0xff]  }
  0x6f   :  { %1001 = vmatprep.subr.bf16.mxu0 %v1578_v53  ;;  %v1659_v42 = vld [vmem:[#allocation8 + $0x8] sm:$0xff]   ;;  %v1913_v53 = vld [vmem:[%s1953_s2] sm:$0xf] }
  0x71   :  { %514 = vmatpush1.bf16.msra.mxu1 %v1493_v22  ;;  %v1542_v22 = vld [vmem:[#allocation5 + $0x148] ss:$16 sps:$4 sm:$0xff]  }
  0x72   :  { %515 = vmatprep.subr.bf16.mxu1 %v1494_v23  ;;  %1002 = vmatpush1.bf16.msra.mxu0 %v1580_v56  ;;  %v1547_v23 = vld [vmem:[#allocation5 + $0x16c] ss:$16 sps:$4 sm:$0xff]  }
  0x73   :  { %1003 = vmatprep.subr.bf16.mxu0 %v1581_v57 }
  0x75   :  { %516 = vmatpush1.bf16.msra.mxu1 %v1496_v24  ;;  %v1545_v24 = vld [vmem:[#allocation5 + $0x168] ss:$16 sps:$4 sm:$0xff]  }
  0x76   :  { %517 = vmatprep.subr.bf16.mxu1 %v1497_v25  ;;  %1004 = vmatpush1.bf16.msra.mxu0 %v1583_v60  ;;  %v1550_v25 = vld [vmem:[#allocation5 + $0x18c] ss:$16 sps:$4 sm:$0xff]  }
  0x77   :  { %1005 = vmatprep.subr.bf16.mxu0 %v1584_v61 }
  0x79   :  { %518 = vmatpush1.bf16.msra.mxu1 %v1499_v26  ;;  %v1548_v26 = vld [vmem:[#allocation5 + $0x188] ss:$16 sps:$4 sm:$0xff]  }
  0x7a   :  { %519 = vmatprep.subr.bf16.mxu1 %v1500_v27  ;;  %1006 = vmatpush1.bf16.msra.mxu0 %v1586_v0  ;;  %v1553_v27 = vld [vmem:[#allocation5 + $0x1ac] ss:$16 sps:$4 sm:$0xff]  }
  0x7b   :  { %1007 = vmatprep.subr.bf16.mxu0 %v1587_v1 }
  0x7d   :  { %520 = vmatpush1.bf16.msra.mxu1 %v1502_v30  ;;  %v1554_v30 = vld [vmem:[#allocation5 + $0x1c8] ss:$16 sps:$4 sm:$0xff]  }
  0x7e   :  { %521 = vmatprep.subr.bf16.mxu1 %v1503_v32  ;;  %1008 = vmatpush1.bf16.msra.mxu0 %v1589_v4  ;;  %v1557_v32 = vld [vmem:[#allocation5 + $0x1e8] ss:$16 sps:$4 sm:$0xff]  }
  0x7f   :  { %1009 = vmatprep.subr.bf16.mxu0 %v1590_v5 }
  0x81   :  { %522 = vmatpush1.bf16.msra.mxu1 %v1505_v35  ;;  %v1604_v35 = vld [vmem:[#allocation7 + $0xe0] ss:$8 sps:$4 sm:$0xff]  }
  0x82   :  { %523 = vmatprep.subr.bf16.mxu1 %v1506_v36  ;;  %1010 = vmatpush1.bf16.msra.mxu0 %v1592_v8  ;;  %v1605_v36 = vld [vmem:[#allocation7 + $0xf4] ss:$8 sps:$4 sm:$0xff]  }
  0x83   :  { %1011 = vmatprep.subr.bf16.mxu0 %v1593_v9  ;;  %v1613_v8 = vld [vmem:[#allocation7 + $0x114] ss:$8 sps:$4 sm:$0xff]   ;;  %v1611_v9 = vld [vmem:[#allocation7 + $0x110] ss:$8 sps:$4 sm:$0xff]  }
  0x85   :  { %524 = vmatpush1.bf16.msra.mxu1 %v1508_v39  ;;  %v1656_v39 = vld [vmem:[#allocation8 + $0x40] sm:$0xff]  }
  0x86   :  { %525 = vmatprep.subr.bf16.mxu1 %v1509_v40  ;;  %1012 = vmatpush1.bf16.msra.mxu0 %v1595_v12  ;;  %v1657_v40 = vld [vmem:[#allocation8] sm:$0xff]   ;;  %v1619_v12 = vld [vmem:[#allocation7 + $0x134] ss:$8 sps:$4 sm:$0xff]  }
  0x87   :  { %1013 = vmatprep.subr.bf16.mxu0 %v1596_v13  ;;  %v1617_v13 = vld [vmem:[#allocation7 + $0x130] ss:$8 sps:$4 sm:$0xff]  }
  0x89   :  { %526 = vmatpush1.bf16.msra.mxu1 %v1511_v43  ;;  %v1660_v43 = vld [vmem:[#allocation8 + $0x50] sm:$0xff]  }
  0x8a   :  { %538 = vmatprep.subr.bf16.mxu1 %v1514_v46  ;;  %1014 = vmatpush1.bf16.msra.mxu0 %v1598_v16  ;;  %v1663_v46 = vld [vmem:[#allocation8 + $0x18] sm:$0xff]  }
  0x8b   :  { %1015 = vmatprep.subr.bf16.mxu0 %v1599_v17  ;;  %v1625_v16 = vld [vmem:[#allocation7 + $0x154] ss:$8 sps:$4 sm:$0xff]   ;;  %v1623_v17 = vld [vmem:[#allocation7 + $0x150] ss:$8 sps:$4 sm:$0xff]  }
  0x8c   :  { %528 = vmatmul.mubr.bf16.vlgmr.msra.gmra.mrb[0].mxu1 %v1902_v50 }
  0x8d   :  { %539 = vmatpush1.bf16.msra.mxu1 %v1512_v49  ;;  %570 = vmatprep.mubr.bf16.mxu1 %v1899_v15  ;;  %v1538_v15 = vld [vmem:[#allocation5 + $0x10c] ss:$16 sps:$4 sm:$0xff]  }
  0x8e   :  { %540 = vmatprep.subr.bf16.mxu1 %v1517_v51  ;;  %1016 = vmatpush1.bf16.msra.mxu0 %v1601_v33  ;;  %v1666_v49 = vld [vmem:[#allocation8 + $0x68] sm:$0xff]  }
  0x8f   :  { %1017 = vmatprep.subr.bf16.mxu0 %v1602_v34 }
  0x91   :  { %541 = vmatpush1.bf16.msra.mxu1 %v1515_v54 }
  0x92   :  { %542 = vmatprep.subr.bf16.mxu1 %v1520_v55  ;;  %1018 = vmatpush1.bf16.msra.mxu0 %v1604_v35  ;;  %v1647_v35 = vld [vmem:[#allocation7 + $0x1d0] ss:$8 sps:$4 sm:$0xff]  }
  0x93   :  { %1019 = vmatprep.subr.bf16.mxu0 %v1605_v36 }
  0x95   :  { %543 = vmatpush1.bf16.msra.mxu1 %v1518_v58 }
  0x96   :  { %544 = vmatprep.subr.bf16.mxu1 %v1523_v59  ;;  %1020 = vmatpush1.bf16.msra.mxu0 %v1607_v37  ;;  %v1652_v37 = vld [vmem:[#allocation7 + $0x1e4] ss:$8 sps:$4 sm:$0xff]  }
  0x97   :  { %1032 = vmatprep.subr.bf16.mxu0 %v1610_v38 }
  0x99   :  { %545 = vmatpush1.bf16.msra.mxu1 %v1521_v62 }
  0x9a   :  { %546 = vmatprep.subr.bf16.mxu1 %v1526_v63 }
  0x9d   :  { %547 = vmatpush1.bf16.msra.mxu1 %v1524_v2 }
  0x9e   :  { %548 = vmatprep.subr.bf16.mxu1 %v1529_v3 }
  0xa1   :  { %549 = vmatpush1.bf16.msra.mxu1 %v1527_v6 }
  0xa2   :  { %550 = vmatprep.subr.bf16.mxu1 %v1532_v7  ;;  %v1608_v7 = vld [vmem:[#allocation7 + $0x100] ss:$8 sps:$4 sm:$0xff]  }
  0xa5   :  { %551 = vmatpush1.bf16.msra.mxu1 %v1530_v10  ;;  %v1616_v10 = vld [vmem:[#allocation7 + $0x124] ss:$8 sps:$4 sm:$0xff]  }
  0xa6   :  { %552 = vmatprep.subr.bf16.mxu1 %v1535_v11  ;;  %v1614_v11 = vld [vmem:[#allocation7 + $0x120] ss:$8 sps:$4 sm:$0xff]  }
  0xa9   :  { %553 = vmatpush1.bf16.msra.mxu1 %v1533_v14  ;;  %v1622_v14 = vld [vmem:[#allocation7 + $0x144] ss:$8 sps:$4 sm:$0xff]  }
  0xaa   :  { %554 = vmatprep.subr.bf16.mxu1 %v1538_v15  ;;  %v1620_v15 = vld [vmem:[#allocation7 + $0x140] ss:$8 sps:$4 sm:$0xff]  }
  0xad   :  { %555 = vmatpush1.bf16.msra.mxu1 %v1536_v18  ;;  %v1628_v18 = vld [vmem:[#allocation7 + $0x164] ss:$8 sps:$4 sm:$0xff]  }
  0xae   :  { %556 = vmatprep.subr.bf16.mxu1 %v1541_v19  ;;  %v1626_v19 = vld [vmem:[#allocation7 + $0x160] ss:$8 sps:$4 sm:$0xff]  }
  0xb1   :  { %557 = vmatpush1.bf16.msra.mxu1 %v1539_v20  ;;  %v1631_v20 = vld [vmem:[#allocation7 + $0x174] ss:$8 sps:$4 sm:$0xff]  }
  0xb2   :  { %558 = vmatprep.subr.bf16.mxu1 %v1544_v21  ;;  %v1629_v21 = vld [vmem:[#allocation7 + $0x170] ss:$8 sps:$4 sm:$0xff]  }
  0xb5   :  { %559 = vmatpush1.bf16.msra.mxu1 %v1542_v22  ;;  %v1634_v22 = vld [vmem:[#allocation7 + $0x184] ss:$8 sps:$4 sm:$0xff]  }
  0xb6   :  { %560 = vmatprep.subr.bf16.mxu1 %v1547_v23  ;;  %v1632_v23 = vld [vmem:[#allocation7 + $0x180] ss:$8 sps:$4 sm:$0xff]  }
  0xb9   :  { %561 = vmatpush1.bf16.msra.mxu1 %v1545_v24  ;;  %v1637_v24 = vld [vmem:[#allocation7 + $0x194] ss:$8 sps:$4 sm:$0xff]  }
  0xba   :  { %562 = vmatprep.subr.bf16.mxu1 %v1550_v25  ;;  %v1635_v25 = vld [vmem:[#allocation7 + $0x190] ss:$8 sps:$4 sm:$0xff]  }
  0xbd   :  { %563 = vmatpush1.bf16.msra.mxu1 %v1548_v26  ;;  %v1640_v26 = vld [vmem:[#allocation7 + $0x1a4] ss:$8 sps:$4 sm:$0xff]  }
  0xbe   :  { %564 = vmatprep.subr.bf16.mxu1 %v1553_v27  ;;  %v1638_v27 = vld [vmem:[#allocation7 + $0x1a0] ss:$8 sps:$4 sm:$0xff]  }
  0xc1   :  { %565 = vmatpush1.bf16.msra.mxu1 %v1551_v28  ;;  %v1643_v28 = vld [vmem:[#allocation7 + $0x1b4] ss:$8 sps:$4 sm:$0xff]  }
  0xc2   :  { %566 = vmatprep.subr.bf16.mxu1 %v1556_v29  ;;  %v1641_v29 = vld [vmem:[#allocation7 + $0x1b0] ss:$8 sps:$4 sm:$0xff]  }
  0xc5   :  { %567 = vmatpush1.bf16.msra.mxu1 %v1554_v30  ;;  %v1646_v30 = vld [vmem:[#allocation7 + $0x1c4] ss:$8 sps:$4 sm:$0xff]  }
  0xc6   :  { %568 = vmatprep.subr.bf16.mxu1 %v1559_v31  ;;  %v1644_v31 = vld [vmem:[#allocation7 + $0x1c0] ss:$8 sps:$4 sm:$0xff]  }
  0xc9   :  { %569 = vmatpush1.bf16.msra.mxu1 %v1557_v32  ;;  %v1649_v32 = vld [vmem:[#allocation7 + $0x1d4] ss:$8 sps:$4 sm:$0xff]  }
  0xca   :  { %1423 = vmatprep.subr.bf16.mxu1 %v1656_v39 }
  0xcc   :  { %571 = vmatmul.mubr.bf16.vlgmr.msra.gmra.mrb[4].mxu1 %v1902_v50  ;;  %v155_v50 = vlaneseq }
  0xcd   :  { %1424 = vmatpush3.bf16.msra.mxu1 %v1657_v40  ;;  %v1650_v40 = vld [vmem:[#allocation7 + $0x1e0] ss:$8 sps:$4 sm:$0xff]  }
  0xce   :  { %1425 = vmatprep.subr.bf16.mxu1 %v1658_v41  ;;  %v1907_v51 = vshrl.u32 %v155_v50, 7 }
  0xd0   :  { %v157_v52 = vsub.s32 0, %v1907_v51  ;;  %v161_v54 = vsub.s32 1, %v1907_v51  ;;  %v165_v33 = vsub.s32 2, %v1907_v51  ;;  %v169_v34 = vsub.s32 3, %v1907_v51  ;;  %v1406_v51 = vld [vmem:[%s1957_s6] ss:$0 sm:$0xff] }
  0xd1   :  { %1426 = vmatpush3.bf16.msra.mxu1 %v1659_v42 }
  0xd2   :  { %1427 = vmatprep.subr.bf16.mxu1 %v1660_v43  ;;  %v158_v55 = vrot.slane %v1913_v53, %v157_v52  ;;  %v162_v56 = vrot.slane %v1913_v53, %v161_v54  ;;  %v166_v36 = vrot.slane %v1913_v53, %v165_v33  ;;  %v170_v38 = vrot.slane %v1913_v53, %v169_v34  ;;  %v1655_v43 = vld [vmem:[#allocation7 + $0x1f4] ss:$8 sps:$4 sm:$0xff]  }
  0xd5   :  { %1428 = vmatpush3.bf16.msra.mxu1 %v1661_v44 }
  0xd6   :  { %1429 = vmatprep.subr.bf16.mxu1 %v1662_v45 }
  0xd9   :  { %1430 = vmatpush3.bf16.msra.mxu1 %v1663_v46 }
  0xda   :  { %1431 = vmatprep.subr.bf16.mxu1 %v1664_v47 }
  0xdd   :  { %1432 = vmatpush3.bf16.msra.mxu1 %v1665_v48 }
  0xde   :  { %1433 = vmatprep.subr.bf16.mxu1 %v1666_v49  ;;  %v1653_v49 = vld [vmem:[#allocation7 + $0x1f0] ss:$8 sps:$4 sm:$0xff]  }
 0x15f   :  { %v529_v57 = vpop.f32.mrb[0].mxu1 }
 0x160   :  { %v530_v58 = vadd.f32 %v529_v57, %v158_v55  ;;  %v531_v59 = vpop.f32.mrb[1].mxu1 }
 0x161   :  { %v532_v60 = vadd.f32 %v531_v59, %v162_v56  ;;  %v533_v61 = vpop.f32.mrb[2].mxu1  ;;  %v1667_v59 = vld [vmem:[#allocation8 + $0x28] sm:$0xff]  }
 0x162   :  { %v581_v62 = vmax.f32 %v530_v58, 0.0  ;;  %v534_v63 = vadd.f32 %v533_v61, %v158_v55  ;;  %v535_v0 = vpop.f32.mrb[3].mxu1  ;;  %1434 = vmatpush3.bf16.msra.mxu1 %v1667_v59  ;;  %v1669_v61 = vld [vmem:[#allocation8 + $0x30] sm:$0xff]  }
 0x163   :  { %v536_v1 = vadd.f32 %v535_v0, %v162_v56  ;;  %v582_v3 = vmax.f32 %v532_v60, 0.0  ;;  %v1668_v60 = vld [vmem:[#allocation8 + $0x70] sm:$0xff]   ;;  %v657_v0 = vld [vmem:[%s1955_s4] sm:$0x3] }
 0x164   :  { %v585_v2 = vmax.f32 %v534_v63, 0.0  ;;  %1435 = vmatprep.subr.bf16.mxu1 %v1668_v60  ;;  %v1671_v63 = vld [vmem:[#allocation8 + $0x38] sm:$0xff]  }
 0x165   :  { %v586_v4 = vmax.f32 %v536_v1, 0.0  ;;  %v662_v1 = vrot.slane %v657_v0, %v157_v52 }
 0x166   :  { %v589_v5 = vpack.c.bf16 %v585_v2, %v581_v62  ;;  %1436 = vmatpush3.bf16.msra.mxu1 %v1669_v61  ;;  %v1670_v62 = vld [vmem:[#allocation8 + $0x78] sm:$0xff]   ;;  %v666_v2 = vrot.slane %v657_v0, %v161_v54 }
 0x167   :  { %v590_v6 = vpack.c.bf16 %v586_v4, %v582_v3  ;;  %1437 = vmatprep.subr.bf16.mxu1 %v1670_v62 }
 0x169   :  { %1021 = vmatprep.mubr.bf16.mxu0 %v590_v6 }
 0x16a   :  { %1022 = vmatmul.mubr.bf16.vlgmr.msra.gmra.mrb[0].mxu0 %v589_v5  ;;  %1438 = vmatpush3.bf16.msra.mxu1 %v1671_v63 }
 0x16b   :  { %1033 = vmatpush1.bf16.msra.mxu0 %v1608_v7 }
 0x16c   :  { %1034 = vmatprep.subr.bf16.mxu0 %v1613_v8 }
 0x16f   :  { %1035 = vmatpush1.bf16.msra.mxu0 %v1611_v9 }
 0x170   :  { %1036 = vmatprep.subr.bf16.mxu0 %v1616_v10 }
 0x173   :  { %1037 = vmatpush1.bf16.msra.mxu0 %v1614_v11 }
 0x174   :  { %1038 = vmatprep.subr.bf16.mxu0 %v1619_v12 }
 0x177   :  { %1039 = vmatpush1.bf16.msra.mxu0 %v1617_v13 }
 0x178   :  { %1040 = vmatprep.subr.bf16.mxu0 %v1622_v14 }
 0x17b   :  { %1041 = vmatpush1.bf16.msra.mxu0 %v1620_v15 }
 0x17c   :  { %1042 = vmatprep.subr.bf16.mxu0 %v1625_v16 }
 0x17f   :  { %1043 = vmatpush1.bf16.msra.mxu0 %v1623_v17 }
 0x180   :  { %1044 = vmatprep.subr.bf16.mxu0 %v1628_v18 }
 0x183   :  { %1045 = vmatpush1.bf16.msra.mxu0 %v1626_v19 }
 0x184   :  { %1046 = vmatprep.subr.bf16.mxu0 %v1631_v20 }
 0x187   :  { %1047 = vmatpush1.bf16.msra.mxu0 %v1629_v21 }
 0x188   :  { %1048 = vmatprep.subr.bf16.mxu0 %v1634_v22 }
 0x18b   :  { %1049 = vmatpush1.bf16.msra.mxu0 %v1632_v23 }
 0x18c   :  { %1050 = vmatprep.subr.bf16.mxu0 %v1637_v24 }
 0x18f   :  { %1051 = vmatpush1.bf16.msra.mxu0 %v1635_v25 }
 0x190   :  { %1052 = vmatprep.subr.bf16.mxu0 %v1640_v26 }
 0x193   :  { %1053 = vmatpush1.bf16.msra.mxu0 %v1638_v27 }
 0x194   :  { %1054 = vmatprep.subr.bf16.mxu0 %v1643_v28 }
 0x197   :  { %1055 = vmatpush1.bf16.msra.mxu0 %v1641_v29 }
 0x198   :  { %1056 = vmatprep.subr.bf16.mxu0 %v1646_v30 }
 0x19b   :  { %1057 = vmatpush1.bf16.msra.mxu0 %v1644_v31 }
 0x19c   :  { %1058 = vmatprep.subr.bf16.mxu0 %v1649_v32 }
 0x19f   :  { %v572_v39 = vpop.f32.mrb[4].mxu1  ;;  %1059 = vmatpush1.bf16.msra.mxu0 %v1647_v35 }
 0x1a0   :  { %v573_v41 = vadd.f32 %v572_v39, %v166_v36  ;;  %v574_v42 = vpop.f32.mrb[5].mxu1  ;;  %1060 = vmatprep.subr.bf16.mxu0 %v1652_v37 }
 0x1a1   :  { %v575_v44 = vadd.f32 %v574_v42, %v170_v38  ;;  %v576_v45 = vpop.f32.mrb[6].mxu1 }
 0x1a2   :  { %v577_v46 = vadd.f32 %v576_v45, %v166_v36  ;;  %v578_v47 = vpop.f32.mrb[7].mxu1  ;;  %v583_v50 = vmax.f32 %v573_v41, 0.0 }
 0x1a3   :  { %v579_v48 = vadd.f32 %v578_v47, %v170_v38  ;;  %1061 = vmatpush1.bf16.msra.mxu0 %v1650_v40  ;;  %v584_v56 = vmax.f32 %v575_v44, 0.0 }
 0x1a4   :  { %v587_v55 = vmax.f32 %v577_v46, 0.0  ;;  %1062 = vmatprep.subr.bf16.mxu0 %v1655_v43 }
 0x1a5   :  { %v588_v57 = vmax.f32 %v579_v48, 0.0 }
 0x1a6   :  { %v591_v53 = vpack.c.bf16 %v587_v55, %v583_v50 }
 0x1a7   :  { %v592_v58 = vpack.c.bf16 %v588_v57, %v584_v56  ;;  %1063 = vmatpush1.bf16.msra.mxu0 %v1653_v49 }
 0x1a9   :  { %1064 = vmatprep.mubr.bf16.mxu0 %v592_v58 }
 0x1aa   :  { %1065 = vmatmul.mubr.bf16.vlgmr.msra.gmra.mrb[0].mxu0 %v591_v53 }
 0x27d   :  { %v1066_v3 = vpop.f32.mrb[0].mxu0 }
 0x27e   :  { %v1445_v4 = vadd.f32 %v1066_v3, %v662_v1  ;;  %v1068_v5 = vpop.f32.mrb[1].mxu0 }
 0x27f   :  { %v1446_v6 = vadd.f32 %v1068_v5, %v666_v2  ;;  %v1070_v7 = vpop.f32.mrb[2].mxu0 }
 0x280   :  { %v1447_v8 = vadd.f32 %v1070_v7, %v662_v1  ;;  %v1072_v9 = vpop.f32.mrb[3].mxu0  ;;  %v1075_v11 = vmax.f32 %v1445_v4, 0.0 }
 0x281   :  { %v1448_v10 = vadd.f32 %v1072_v9, %v666_v2  ;;  %v1076_v13 = vmax.f32 %v1446_v6, 0.0 }
 0x282   :  { %v1077_v12 = vmax.f32 %v1447_v8, 0.0 }
 0x283   :  { %v1078_v14 = vmax.f32 %v1448_v10, 0.0 }
 0x284   :  { %v1079_v15 = vpack.c.bf16 %v1077_v12, %v1075_v11 }
 0x285   :  { %v1080_v16 = vpack.c.bf16 %v1078_v14, %v1076_v13 }
 0x287   :  { %1248 = vmatprep.mubr.bf16.mxu1 %v1080_v16 }
 0x288   :  { %1249 = vmatmul.mubr.bf16.vlgmr.msra.gmra.mrb[8].mxu1 %v1079_v15 }
 0x35b   :  { %v1439_v52 = vpop.f32.mrb[8].mxu1 }
 0x35c   :  { %v1440_v54 = vpop.f32.mrb[9].mxu1 }
 0x35d   :  { %v1441_v17 = vadd.f32 %v1440_v54, %v1439_v52  ;;  %v1442_v18 = vpop.f32.mrb[10].mxu1 }
 0x35e   :  { %v1443_v19 = vpop.f32.mrb[11].mxu1 }
 0x35f   :  { %v1251_v20 = vadd.f32 %v1441_v17, %v1406_v51  ;;  %v1444_v21 = vadd.f32 %v1443_v19, %v1442_v18 }
 0x361   :  { %1257 = vst [vmem:[#allocation10] sm:$0xff] %v1251_v20  ;;  %v1254_v22 = vadd.f32 %v1444_v21, %v1406_v51 }
 0x363   :  { %1258 = vst [vmem:[#allocation10 + $0x8] sm:$0xff] %v1254_v22 }
 0x364   :  { %1771 = shalt.err (!%p1768_p8)
}
 0x365   :  { %s1772_s15 = scalar_lea.hbm %s1958_s7, 256 }
 0x366   :  { %p1773_p9 = scmp.ne.s32.totalorder %s1958_s7, %s1772_s15  ;;  %p1776_p10 = scmp.lt.u32.totalorder %s1772_s15, %s1958_s7 }
 0x368   :  { %p1778_p11 = pnand %p1776_p10, %p1773_p9 }
 0x36a   :  { %1781 = shalt.err (!%p1778_p11)
}
 0x36b   :  { %1270 = dma.vmem_to_hbm [thread:$0]  %s1265_s10, 256, %s1958_s7, [#allocation4], %s1795_s0, %s1795_s0, %s1796_s27  }
 0x36c   :  { %1788 = dma.done.wait [#allocation4], 256  }
 0x36d   :  { %1789 = vsyncadd [#allocation4], 4294967040 }
 0x36e   :  { %1274 = vsyncpa [#allocation3], 1 }
 0x36f   :  { %1275 = vsyncpa [#allocation6], 1 }
 0x370   :  { %1276 = vsyncpa [#allocation9], 1 }
 0x371   :  { %1277 = vsyncpa [#allocation4], 1 }

</bundles_post_ra>
